<compile_context>
chip_gen: v7x
topology: tpu7x:2x2x1
jax: 0.10.0
libtpu: 0.0.40
codegen_flags: <defaults>
</compile_context>

<pallas_src>
import functools

import jax
import jax.numpy as jnp
from jax.experimental import pallas as pl
from jax.experimental.pallas import tpu as pltpu  # noqa: F401  (TPU backend assumed)

LANE = 128
SUBLANE = 8
NEG = -1e30  # masked-lane fill for softmax/argmax


def _round_up(n, m):
    return ((n + m - 1) // m) * m


# ----------------------------------------------------------------------------
# Parameter packing (done once, outside the hot path)
# ----------------------------------------------------------------------------
def pack_params(params):
    """Fuse the 13 Policy parameters into one lane-dense, tile-aligned slab."""
    obs_dim, H = params["wa1"].shape
    A = params["wd"].shape[1]
    W = _round_up(2 * H, LANE)               # fused hidden width (>= 128, lane-dense)
    assert A + 3 <= W, "output slab needs room for probs | value | logp | action"
    x_pad = _round_up(obs_dim + 1, SUBLANE)  # obs + ones-column, sublane aligned

    # Layer 1: [Wa1 | Wc1]; biases live in row `obs_dim`, hit by x's ones-column.
    w1 = jnp.zeros((x_pad, W), jnp.float32)
    w1 = w1.at[:obs_dim, :H].set(params["wa1"])
    w1 = w1.at[:obs_dim, H:2 * H].set(params["wc1"])
    w1 = w1.at[obs_dim, :H].set(params["ba1"][0])
    w1 = w1.at[obs_dim, H:2 * H].set(params["bc1"][0])

    # Layer 2: block-diagonal [Wa2 0; 0 Wc2]; bias in an 8-row strip (row 0 used).
    w2 = jnp.zeros((W, W), jnp.float32)
    w2 = w2.at[:H, :H].set(params["wa2"])
    w2 = w2.at[H:2 * H, H:2 * H].set(params["wc2"])
    b2 = jnp.zeros((SUBLANE, W), jnp.float32)
    b2 = b2.at[0, :H].set(params["ba2"][0])
    b2 = b2.at[0, H:2 * H].set(params["bc2"][0])

    # Heads: cols [0, A) = dist logits (actor half), col A = value (critic half).
    w3 = jnp.zeros((W, W), jnp.float32)
    w3 = w3.at[:H, :A].set(params["wd"])
    w3 = w3.at[H:2 * H, A:A + 1].set(params["wv"])
    b3 = jnp.zeros((SUBLANE, W), jnp.float32)
    b3 = b3.at[0, :A].set(params["bd"][0])
    b3 = b3.at[0, A].set(params["bv"][0, 0])

    slab = jnp.concatenate([w1, w2, b2, w3, b3], axis=0)  # (x_pad + 2W + 16, W)
    meta = dict(obs_dim=obs_dim, H=H, A=A, W=W, x_pad=x_pad)
    return slab, meta


# ----------------------------------------------------------------------------
# Kernel
# ----------------------------------------------------------------------------
def _policy_act_kernel(x_ref, p_ref, out_ref, *, A, W, x_pad):
    # Static, tile-aligned row offsets into the fused parameter slab.
    w2_lo = x_pad
    b2_lo = w2_lo + W
    w3_lo = b2_lo + SUBLANE
    b3_lo = w3_lo + W

    x = x_ref[...]  # (Bp, x_pad); ones-column folds layer-1 biases

    # --- 3 lane-dense MXU matmuls (actor & critic fused side-by-side) ---------
    h1 = jnp.tanh(
        jnp.dot(x, p_ref[0:x_pad, :], preferred_element_type=jnp.float32))
    h2 = jnp.tanh(
        jnp.dot(h1, p_ref[w2_lo:b2_lo, :], preferred_element_type=jnp.float32)
        + p_ref[b2_lo:b2_lo + 1, :])
    head = (
        jnp.dot(h2, p_ref[w3_lo:b3_lo, :], preferred_element_type=jnp.float32)
        + p_ref[b3_lo:b3_lo + 1, :])          # cols [0, A) = logits, col A = value

    Bp = head.shape[0]
    lane = jax.lax.broadcasted_iota(jnp.int32, (Bp, W), 1)
    valid = lane < A

    # --- masked, numerically-stable softmax / log-softmax over 128 lanes ------
    logits = jnp.where(valid, head, NEG)
    m = jnp.max(logits, axis=-1, keepdims=True)
    shifted = logits - m
    ex = jnp.exp(shifted)
    denom = jnp.sum(ex, axis=-1, keepdims=True)
    probs = ex * pl.reciprocal(denom, approx=True)     # EUP vrcp (idle slot)
    log_probs = shifted - jnp.log(denom)

    # dist.mode(): first-max argmax taken from logits (softmax is monotone),
    # independent of the exp / approx-reciprocal chain.
    is_max = logits >= m
    action = jnp.min(jnp.where(is_max, lane, W), axis=-1, keepdims=True)  # (Bp,1) i32

    # dist.log_probs(action): gather log-softmax at the chosen action.
    alogp = jnp.sum(jnp.where(lane == action, log_probs, 0.0),
                    axis=-1, keepdims=True)

    # NOTE: dist.entropy().mean() is computed then discarded inside Policy.act,
    # so it is intentionally not materialized here.

    # --- single lane-dense output slab -----------------------------------------
    #   [:, 0:A) = probs, [:, A] = value, [:, A+1] = log-prob, [:, A+2] = action.
    out = jnp.where(valid, probs, 0.0)
    out = jnp.where(lane == A, head, out)              # head col A already = value
    out = jnp.where(lane == A + 1, alogp, out)
    out = jnp.where(lane == A + 2, action.astype(jnp.float32), out)
    out_ref[...] = out


# ----------------------------------------------------------------------------
# Wrapper
# ----------------------------------------------------------------------------
def policy_act(x, rnn_hxs, masks, param_slab, meta):
    """Pallas-backed Policy.act (deterministic=True, MLPBase + Discrete head).
    Returns (value, action, action_log_probs, rnn_hxs, probs)."""
    B = x.shape[0]
    obs_dim, A, W, x_pad = meta["obs_dim"], meta["A"], meta["W"], meta["x_pad"]
    Bp = _round_up(max(B, SUBLANE), SUBLANE)           # fill the sublane granule

    # Augment obs with a ones-column (folds layer-1 biases into the fused matmul)
    # and pad batch / feature dims to the (8, ·) granule.
    x_aug = jnp.zeros((Bp, x_pad), jnp.float32)
    x_aug = x_aug.at[:B, :obs_dim].set(x.astype(jnp.float32))
    x_aug = x_aug.at[:B, obs_dim].set(1.0)

    def full_spec(shape):
        return pl.BlockSpec(shape, lambda: tuple(0 for _ in shape))

    kernel = functools.partial(_policy_act_kernel, A=A, W=W, x_pad=x_pad)
    out = pl.pallas_call(
        kernel,
        out_shape=jax.ShapeDtypeStruct((Bp, W), jnp.float32),
        grid=(),
        in_specs=[full_spec(x_aug.shape), full_spec(param_slab.shape)],
        out_specs=full_spec((Bp, W)),
    )(x_aug, param_slab)

    probs = out[:B, :A]
    value = out[:B, A:A + 1]
    alogp = out[:B, A + 1:A + 2]
    action = out[:B, A + 2:A + 3].astype(jnp.int32)    # exact: small integer indices

    # MLPBase is non-recurrent: GRU is skipped and rnn_hxs / masks pass through.
    # TODO(synk): recurrent GRU path (_forward_gru) not implemented.
    del masks
    return value, action, alogp, rnn_hxs, probs


# ----------------------------------------------------------------------------
# Synthetic parameters (MLPBase + Categorical shapes)
# ----------------------------------------------------------------------------
def init_params(key, obs_dim, hidden, n_actions):
    ks = jax.random.split(key, 6)

    def lin(kw, fan_in, fan_out, gain):
        w = gain * jax.random.normal(kw, (fan_in, fan_out), jnp.float32) / jnp.sqrt(fan_in)
        b = jnp.zeros((1, fan_out), jnp.float32)
        return w, b

    wa1, ba1 = lin(ks[0], obs_dim, hidden, 1.4142)
    wa2, ba2 = lin(ks[1], hidden, hidden, 1.4142)
    wc1, bc1 = lin(ks[2], obs_dim, hidden, 1.4142)
    wc2, bc2 = lin(ks[3], hidden, hidden, 1.4142)
    wv, bv = lin(ks[4], hidden, 1, 1.0)
    wd, bd = lin(ks[5], hidden, n_actions, 0.01)
    return dict(
        wa1=wa1, ba1=ba1, wa2=wa2, ba2=ba2,
        wc1=wc1, bc1=bc1, wc2=wc2, bc2=bc2,
        wv=wv, bv=bv, wd=wd, bd=bd,
    )


if __name__ == "__main__":
    B = 4            # num_processes
    OBS_DIM = 16     # obs_shape = (16,)
    HIDDEN = 64      # MLPBase default hidden_size
    N_ACTIONS = 8    # action_space = Discrete(8)

    key = jax.random.PRNGKey(0)
    k_x, k_p = jax.random.split(key)

    inputs = jax.random.normal(k_x, (B, OBS_DIM), jnp.float32)
    rnn_hxs = jnp.zeros((B, 1), jnp.float32)   # recurrent_hidden_state_size == 1
    masks = jnp.ones((B, 1), jnp.float32)
    params = init_params(k_p, OBS_DIM, HIDDEN, N_ACTIONS)

    param_slab, meta = pack_params(params)     # done once, not per act() call

    value, action, action_log_probs, rnn_hxs_out, probs = policy_act(
        inputs, rnn_hxs, masks, param_slab, meta
    )
    jax.block_until_ready((value, action, action_log_probs, rnn_hxs_out, probs))

    # Pure-JAX reference of the original (unfused) forward.
    def ref(x, p):
        ha = jnp.tanh(x @ p["wa1"] + p["ba1"])
        ha = jnp.tanh(ha @ p["wa2"] + p["ba2"])
        hc = jnp.tanh(x @ p["wc1"] + p["bc1"])
        hc = jnp.tanh(hc @ p["wc2"] + p["bc2"])
        v = hc @ p["wv"] + p["bv"]
        logits = ha @ p["wd"] + p["bd"]
        pr = jax.nn.softmax(logits, axis=-1)
        act = jnp.argmax(logits, axis=-1, keepdims=True).astype(jnp.int32)
        lp = jnp.take_along_axis(jax.nn.log_softmax(logits, axis=-1), act, axis=-1)
        return v, act, lp, pr

    v_r, a_r, lp_r, pr_r = ref(inputs, params)
    assert value.shape == (B, 1) and action.shape == (B, 1)
    assert action_log_probs.shape == (B, 1) and probs.shape == (B, N_ACTIONS)
    assert jnp.allclose(value, v_r, atol=1e-4)
    assert jnp.all(action == a_r)
    assert jnp.allclose(action_log_probs, lp_r, atol=1e-4)
    assert jnp.allclose(probs, pr_r, atol=1e-3)   # approx-reciprocal softmax denom

    print("KERNEL_OK")
</pallas_src>

<mosaic_0001>
module attributes {stable_mosaic.version = 11 : i64} {
  func.func @_policy_act_kernel(%arg0: memref<8x24xf32, #tpu.memory_space<vmem>>, %arg1: memref<296x128xf32, #tpu.memory_space<vmem>>, %arg2: memref<8x128xf32, #tpu.memory_space<vmem>>) attributes {dimension_semantics = [], scalar_prefetch = 0 : i64, scratch_operands = 0 : i64, tpu.core_type = #tpu.core_type<tc>} {
    %c0 = arith.constant 0 : index
    %c0_0 = arith.constant 0 : index
    %0 = vector.load %arg0[%c0, %c0_0] : memref<8x24xf32, #tpu.memory_space<vmem>>, vector<8x24xf32>
    %c0_1 = arith.constant 0 : index
    %c0_2 = arith.constant 0 : index
    %1 = vector.load %arg1[%c0_1, %c0_2] : memref<296x128xf32, #tpu.memory_space<vmem>>, vector<24x128xf32>
    %cst = arith.constant dense<0.000000e+00> : vector<8x128xf32>
    %2 = tpu.matmul %0, %1, %cst {dimension_numbers = #tpu.dot_dimension_numbers<[1], [0], [0], [1], [0, 0, 1, 1], [], []>} : vector<8x24xf32>, vector<24x128xf32>, vector<8x128xf32> -> vector<8x128xf32>
    %3 = math.tanh %2 : vector<8x128xf32>
    %c24 = arith.constant 24 : index
    %c0_3 = arith.constant 0 : index
    %4 = vector.load %arg1[%c24, %c0_3] : memref<296x128xf32, #tpu.memory_space<vmem>>, vector<128x128xf32>
    %cst_4 = arith.constant dense<0.000000e+00> : vector<8x128xf32>
    %5 = tpu.matmul %3, %4, %cst_4 {dimension_numbers = #tpu.dot_dimension_numbers<[1], [0], [0], [1], [0, 0, 1, 1], [], []>} : vector<8x128xf32>, vector<128x128xf32>, vector<8x128xf32> -> vector<8x128xf32>
    %c152 = arith.constant 152 : index
    %c0_5 = arith.constant 0 : index
    %6 = vector.load %arg1[%c152, %c0_5] : memref<296x128xf32, #tpu.memory_space<vmem>>, vector<1x128xf32>
    %7 = vector.broadcast %6 : vector<1x128xf32> to vector<8x128xf32>
    %8 = arith.addf %5, %7 : vector<8x128xf32>
    %9 = math.tanh %8 : vector<8x128xf32>
    %c160 = arith.constant 160 : index
    %c0_6 = arith.constant 0 : index
    %10 = vector.load %arg1[%c160, %c0_6] : memref<296x128xf32, #tpu.memory_space<vmem>>, vector<128x128xf32>
    %cst_7 = arith.constant dense<0.000000e+00> : vector<8x128xf32>
    %11 = tpu.matmul %9, %10, %cst_7 {dimension_numbers = #tpu.dot_dimension_numbers<[1], [0], [0], [1], [0, 0, 1, 1], [], []>} : vector<8x128xf32>, vector<128x128xf32>, vector<8x128xf32> -> vector<8x128xf32>
    %c288 = arith.constant 288 : index
    %c0_8 = arith.constant 0 : index
    %12 = vector.load %arg1[%c288, %c0_8] : memref<296x128xf32, #tpu.memory_space<vmem>>, vector<1x128xf32>
    %13 = vector.broadcast %12 : vector<1x128xf32> to vector<8x128xf32>
    %14 = arith.addf %11, %13 : vector<8x128xf32>
    %15 = tpu.iota {dimensions = array<i32: 1>} : vector<8x128xi32>
    %c8_i32 = arith.constant 8 : i32
    %16 = vector.broadcast %c8_i32 : i32 to vector<8x128xi32>
    %17 = arith.cmpi slt, %15, %16 : vector<8x128xi32>
    %cst_9 = arith.constant -1.000000e+30 : f32
    %18 = vector.broadcast %cst_9 : f32 to vector<8x128xf32>
    %19 = arith.select %17, %14, %18 : vector<8x128xi1>, vector<8x128xf32>
    %cst_10 = arith.constant dense<0xFF800000> : vector<8xf32>
    %20 = vector.multi_reduction <maximumf>, %19, %cst_10 [1] : vector<8x128xf32> to vector<8xf32>
    %21 = vector.shape_cast %20 : vector<8xf32> to vector<8x1xf32>
    %22 = vector.broadcast %21 : vector<8x1xf32> to vector<8x128xf32>
    %23 = arith.subf %19, %22 : vector<8x128xf32>
    %24 = math.exp %23 : vector<8x128xf32>
    %cst_11 = arith.constant dense<0.000000e+00> : vector<8xf32>
    %25 = vector.multi_reduction <add>, %24, %cst_11 [1] : vector<8x128xf32> to vector<8xf32>
    %26 = vector.shape_cast %25 : vector<8xf32> to vector<8x1xf32>
    %27 = tpu.reciprocal %26 {approx = true} : vector<8x1xf32> -> vector<8x1xf32>
    %28 = vector.broadcast %27 : vector<8x1xf32> to vector<8x128xf32>
    %29 = arith.mulf %24, %28 : vector<8x128xf32>
    %30 = math.log %26 : vector<8x1xf32>
    %31 = vector.broadcast %30 : vector<8x1xf32> to vector<8x128xf32>
    %32 = arith.subf %23, %31 : vector<8x128xf32>
    %33 = vector.broadcast %21 : vector<8x1xf32> to vector<8x128xf32>
    %34 = arith.cmpf oge, %19, %33 : vector<8x128xf32>
    %c128_i32 = arith.constant 128 : i32
    %35 = vector.broadcast %c128_i32 : i32 to vector<8x128xi32>
    %36 = arith.select %34, %15, %35 : vector<8x128xi1>, vector<8x128xi32>
    %cst_12 = arith.constant dense<2147483647> : vector<8xi32>
    %37 = vector.multi_reduction <minsi>, %36, %cst_12 [1] : vector<8x128xi32> to vector<8xi32>
    %38 = vector.shape_cast %37 : vector<8xi32> to vector<8x1xi32>
    %39 = vector.broadcast %38 : vector<8x1xi32> to vector<8x128xi32>
    %40 = arith.cmpi eq, %15, %39 : vector<8x128xi32>
    %cst_13 = arith.constant 0.000000e+00 : f32
    %41 = vector.broadcast %cst_13 : f32 to vector<8x128xf32>
    %42 = arith.select %40, %32, %41 : vector<8x128xi1>, vector<8x128xf32>
    %cst_14 = arith.constant dense<0.000000e+00> : vector<8xf32>
    %43 = vector.multi_reduction <add>, %42, %cst_14 [1] : vector<8x128xf32> to vector<8xf32>
    %44 = vector.shape_cast %43 : vector<8xf32> to vector<8x1xf32>
    %cst_15 = arith.constant 0.000000e+00 : f32
    %45 = vector.broadcast %cst_15 : f32 to vector<8x128xf32>
    %46 = arith.select %17, %29, %45 : vector<8x128xi1>, vector<8x128xf32>
    %c8_i32_16 = arith.constant 8 : i32
    %47 = vector.broadcast %c8_i32_16 : i32 to vector<8x128xi32>
    %48 = arith.cmpi eq, %15, %47 : vector<8x128xi32>
    %49 = arith.select %48, %14, %46 : vector<8x128xi1>, vector<8x128xf32>
    %c9_i32 = arith.constant 9 : i32
    %50 = vector.broadcast %c9_i32 : i32 to vector<8x128xi32>
    %51 = arith.cmpi eq, %15, %50 : vector<8x128xi32>
    %52 = vector.shape_cast %44 : vector<8x1xf32> to vector<8x1xf32>
    %53 = vector.broadcast %52 : vector<8x1xf32> to vector<8x128xf32>
    %54 = arith.select %51, %53, %49 : vector<8x128xi1>, vector<8x128xf32>
    %c10_i32 = arith.constant 10 : i32
    %55 = vector.broadcast %c10_i32 : i32 to vector<8x128xi32>
    %56 = arith.cmpi eq, %15, %55 : vector<8x128xi32>
    %57 = arith.sitofp %38 : vector<8x1xi32> to vector<8x1xf32>
    %58 = vector.shape_cast %57 : vector<8x1xf32> to vector<8x1xf32>
    %59 = vector.broadcast %58 : vector<8x1xf32> to vector<8x128xf32>
    %60 = arith.select %56, %59, %54 : vector<8x128xi1>, vector<8x128xf32>
    %c0_17 = arith.constant 0 : index
    %c0_18 = arith.constant 0 : index
    %61 = vector.load %arg2[%c0_17, %c0_18] : memref<8x128xf32, #tpu.memory_space<vmem>>, vector<8x128xf32>
    tpu.vector_store %arg2[%c0_17, %c0_18], %60 {strides = array<i32>} : memref<8x128xf32, #tpu.memory_space<vmem>>, vector<8x128xf32>,
    return
  }
}

</mosaic_0001>

<bundles_post_ra>
// kernel: tpu_custom_call.1
= control target key start
LH: loop header
LB: loop body
LE: loop exit
PB: predicated region body
PF: predicated region fallthrough
CT: control target
= control target key end

     0   :  { %7 = vsyncpa [#allocation3], 0  ;;  %s710_s0 = inlined_call_operand.hbm [shape: f32[8,24], index: 0, kind: input, shape index: {}]   ;;  %s711_s1 = inlined_call_operand.hbm [shape: f32[296,128], index: 1, kind: input, shape index: {}]   ;;  %s712_s2 = inlined_call_operand.hbm [shape: f32[8,128], index: 2, kind: output, shape index: {}]  }
   0x1   :  { %8 = vsyncpa [#allocation6], 0 }
   0x2   :  { %9 = vsyncpa [#allocation4], 0  ;;  %s622_s9 = smov [#allocation2]   ;;  %s623_s11 = smov [#allocation5]  }
   0x3   :  { %s16_s10 = sshll.u32 %s622_s9, 4  ;;  %s25_s12 = sshll.u32 %s623_s11, 4  ;;  %s17_s10 = int_to_ptr.vmem [resolvable:$true] %s16_s10  ;;  %s645_s12 = int_to_ptr.vmem [resolvable:$true] %s25_s12 }
   0x4   :  { %s550_s15 = scalar_lea.hbm %s710_s0, 128 }
   0x5   :  { %p551_p0 = scmp.ne.s32.totalorder %s710_s0, %s550_s15  ;;  %p554_p1 = scmp.lt.u32.totalorder %s550_s15, %s710_s0 }
   0x7   :  { %p556_p2 = pnand %p554_p1, %p551_p0 }
   0x9   :  { %559 = shalt.err (!%p556_p2)
}
   0xa   :  { %s560_s20 = scalar_lea.vmem %s17_s10, 128  ;;  %p565_p4 = scmp.lt.s32.totalorder %s17_s10, %s17_s10 }
   0xb   :  { %p561_p3 = scmp.ne.s32.totalorder %s17_s10, %s560_s20  ;;  %p566_p5 = scmp.lt.s32.totalorder %s560_s20, %s560_s20 }
   0xd   :  { %p567_p6 = por %p566_p5, %p565_p4 }
   0xf   :  { %p568_p7 = pnand %p567_p6, %p561_p3 }
  0x11   :  { %571 = shalt.err (!%p568_p7)
}
  0x12   :  { %19 = dma.hbm_to_vmem [thread:$0]  %s710_s0, 128, %s17_s10, [#allocation3]  }
  0x13   :  { %s572_s25 = scalar_lea.hbm %s711_s1, 4736 }
  0x14   :  { %p573_p8 = scmp.ne.s32.totalorder %s711_s1, %s572_s25  ;;  %p576_p9 = scmp.lt.u32.totalorder %s572_s25, %s711_s1 }
  0x16   :  { %p578_p10 = pnand %p576_p9, %p573_p8 }
  0x18   :  { %581 = shalt.err (!%p578_p10)
}
  0x19   :  { %s582_s30 = scalar_lea.vmem %s645_s12, 4736  ;;  %p587_p12 = scmp.lt.s32.totalorder %s645_s12, %s645_s12 }
  0x1a   :  { %p583_p11 = scmp.ne.s32.totalorder %s645_s12, %s582_s30  ;;  %p588_p13 = scmp.lt.s32.totalorder %s582_s30, %s582_s30 }
  0x1c   :  { %p589_p0 = por %p588_p13, %p587_p12 }
  0x1e   :  { %p590_p1 = pnand %p589_p0, %p583_p11 }
  0x20   :  { %593 = shalt.err (!%p590_p1)
}
  0x21   :  { %s624_s0 = smov 128   ;;  %s625_s3 = smov 8  }
  0x22   :  { %31 = dma.hbm_to_vmem [thread:$0]  %s711_s1, 4736, %s645_s12, [#allocation6], %s624_s0, %s624_s0, %s625_s3  }
  0x23   :  { %616 = dma.done.wait [#allocation3], 128  }
  0x24   :  { %617 = vsyncadd [#allocation3], 4294967168 }
  0x25   :  { %618 = dma.done.wait [#allocation6], 4736  }
  0x26   :  { %619 = vsyncadd [#allocation6], 4294962560  ;;  %v626_v0 = vmov 0.0|0.0   ;;  %vm627_vm0 = vmmov 0   ;;  %v628_v1 = vmov 0.0   ;;  %v39_v2 = vld [vmem:[#allocation5] sm:$0xff]  ;;  %v300_v63 = vlaneseq }
  0x27   :  { %481 = vmatprep.subr.bf16.mxu0 %v626_v0  ;;  %408 = vmatprep.mubr.msk.f32.mxu0 %vm627_vm0, %v628_v1  ;;  %v40_v3 = vld [vmem:[#allocation5 + $0x8] sm:$0xff]  ;;  %v117_v5 = vld [vmem:[#allocation5 + $0x18] sm:$0xff]  ;;  %v118_v6 = vld [vmem:[#allocation5 + $0x20] sm:$0xff]  ;;  %vm42_vm1 = vcmask 195584   ;;  %s629_s1 = smov [#allocation7]  }
  0x28   :  { %484 = vmatprep.subr.bf16.mxu1 %v626_v0  ;;  %443 = vmatprep.mubr.msk.f32.mxu1 %vm627_vm0, %v628_v1  ;;  %v482_v4 = vpack.c.bf16 %v40_v3, %v39_v2  ;;  %v485_v7 = vpack.c.bf16 %v118_v6, %v117_v5  ;;  %v119_v8 = vld [vmem:[#allocation5 + $0x28] sm:$0xff]  ;;  %v120_v9 = vld [vmem:[#allocation5 + $0x30] sm:$0xff]  ;;  %v38_v12 = vld [vmem:[#allocation2] sm:$0xff]  ;;  %s351_s6 = sshll.u32 %s629_s1, 4  ;;  %s352_s6 = int_to_ptr.vmem [resolvable:$true] %s351_s6 }
  0x29   :  { %v41_v10 = vld [vmem:[#allocation5 + $0x10] sm:$0xff]  ;;  %v488_v11 = vpack.c.bf16 %v120_v9, %v119_v8  ;;  %v121_v13 = vld [vmem:[#allocation5 + $0x38] sm:$0xff]  ;;  %v122_v14 = vld [vmem:[#allocation5 + $0x40] sm:$0xff]  ;;  %s594_s7 = scalar_lea.vmem %s352_s6, 128  ;;  %p599_p3 = scmp.lt.s32.totalorder %s352_s6, %s352_s6 }
  0x2a   :  { %483 = vmatpush3.bf16.msra.mxu0 %v482_v4  ;;  %486 = vmatpush3.bf16.msra.mxu1 %v485_v7  ;;  %v491_v15 = vpack.c.bf16 %v122_v14, %v121_v13  ;;  %v123_v16 = vld [vmem:[#allocation5 + $0x48] sm:$0xff]  ;;  %v124_v17 = vld [vmem:[#allocation5 + $0x50] sm:$0xff]  ;;  %v125_v19 = vld [vmem:[#allocation5 + $0x58] sm:$0xff]  ;;  %p595_p2 = scmp.ne.s32.totalorder %s352_s6, %s594_s7  ;;  %p600_p4 = scmp.lt.s32.totalorder %s594_s7, %s594_s7 }
  0x2b   :  { %406 = vmatprep.subr.mxu0 %v628_v1  ;;  %487 = vmatprep.subr.bf16.mxu1 %v626_v0  ;;  %v494_v18 = vpack.c.bf16 %v124_v17, %v123_v16  ;;  %v126_v20 = vld [vmem:[#allocation5 + $0x60] sm:$0xff]  ;;  %v127_v22 = vld [vmem:[#allocation5 + $0x68] sm:$0xff]  ;;  %v128_v23 = vld [vmem:[#allocation5 + $0x70] sm:$0xff] }
  0x2c   :  { %v497_v21 = vpack.c.bf16 %v126_v20, %v125_v19  ;;  %v500_v24 = vpack.c.bf16 %v128_v23, %v127_v22  ;;  %v129_v25 = vld [vmem:[#allocation5 + $0x78] sm:$0xff]  ;;  %v130_v26 = vld [vmem:[#allocation5 + $0x80] sm:$0xff]  ;;  %v131_v28 = vld [vmem:[#allocation5 + $0x88] sm:$0xff]  ;;  %p601_p5 = por %p600_p4, %p599_p3 }
  0x2d   :  { %v503_v27 = vpack.c.bf16 %v130_v26, %v129_v25  ;;  %v132_v29 = vld [vmem:[#allocation5 + $0x90] sm:$0xff]  ;;  %v209_v31 = vld [vmem:[#allocation5 + $0xa0] sm:$0xff]  ;;  %v210_v32 = vld [vmem:[#allocation5 + $0xa8] sm:$0xff] }
  0x2e   :  { %407 = vmatpush3.msra.mxu0 %v41_v10  ;;  %489 = vmatpush3.bf16.msra.mxu1 %v488_v11  ;;  %v506_v30 = vpack.c.bf16 %v132_v29, %v131_v28  ;;  %v211_v33 = vld [vmem:[#allocation5 + $0xb0] sm:$0xff]  ;;  %v509_v34 = vpack.c.bf16 %v210_v32, %v209_v31  ;;  %v212_v35 = vld [vmem:[#allocation5 + $0xb8] sm:$0xff]  ;;  %v213_v37 = vld [vmem:[#allocation5 + $0xc0] sm:$0xff]  ;;  %p602_p6 = pnand %p601_p5, %p595_p2 }
  0x2f   :  { %409 = vmatmul.mubr.msk.f32.vlgmr.msra.gmra.mrb[0].mxu0 %vm42_vm1, %v38_v12  ;;  %490 = vmatprep.subr.bf16.mxu1 %v626_v0  ;;  %v512_v36 = vpack.c.bf16 %v212_v35, %v211_v33  ;;  %v214_v38 = vld [vmem:[#allocation5 + $0xc8] sm:$0xff]  ;;  %v215_v40 = vld [vmem:[#allocation5 + $0xd0] sm:$0xff]  ;;  %v216_v41 = vld [vmem:[#allocation5 + $0xd8] sm:$0xff] }
  0x30   :  { %508 = vmatprep.subr.bf16.mxu0 %v626_v0  ;;  %478 = vmatprep.mubr.msk.f32.mxu0 %vm627_vm0, %v628_v1  ;;  %v515_v39 = vpack.c.bf16 %v214_v38, %v213_v37  ;;  %v518_v42 = vpack.c.bf16 %v216_v41, %v215_v40  ;;  %v217_v43 = vld [vmem:[#allocation5 + $0xe0] sm:$0xff]  ;;  %v218_v44 = vld [vmem:[#allocation5 + $0xe8] sm:$0xff]  ;;  %v219_v49 = vld [vmem:[#allocation5 + $0xf0] sm:$0xff]  ;;  %v301_v1 = vand.u32 127, %v300_v63 }
  0x31   :  { %510 = vmatpush3.bf16.msra.mxu0 %v509_v34  ;;  %v521_v45 = vpack.c.bf16 %v218_v44, %v217_v43  ;;  %v220_v50 = vld [vmem:[#allocation5 + $0xf8] sm:$0xff]  ;;  %v221_v52 = vld [vmem:[#allocation5 + $0x100] sm:$0xff]  ;;  %v222_v53 = vld [vmem:[#allocation5 + $0x108] sm:$0xff] }
  0x32   :  { %492 = vmatpush3.bf16.msra.mxu1 %v491_v15  ;;  %511 = vmatprep.subr.bf16.mxu0 %v626_v0  ;;  %v524_v51 = vpack.c.bf16 %v220_v50, %v219_v49  ;;  %v527_v54 = vpack.c.bf16 %v222_v53, %v221_v52  ;;  %v223_v55 = vld [vmem:[#allocation5 + $0x110] sm:$0xff]  ;;  %v224_v56 = vld [vmem:[#allocation5 + $0x118] sm:$0xff]  ;;  %v363_v2 = vld [vmem:[#allocation5 + $0x120] ss:$0 sm:$0xff]  ;;  %vm302_vm2 = vcmp.lt.s32.totalorder %v301_v1, 8  ;;  %vm337_vm6 = vcmp.eq.s32.totalorder %v301_v1, 8 }
  0x33   :  { %493 = vmatprep.subr.bf16.mxu1 %v626_v0  ;;  %v530_v57 = vpack.c.bf16 %v224_v56, %v223_v55  ;;  %v362_v58 = vld [vmem:[#allocation5 + $0x98] ss:$0 sm:$0xff]  ;;  %vm339_vm7 = vcmp.eq.s32.totalorder %v301_v1, 9  ;;  %vm341_vm8 = vcmp.eq.s32.totalorder %v301_v1, 10 }
  0x35   :  { %513 = vmatpush3.bf16.msra.mxu0 %v512_v36 }
  0x36   :  { %495 = vmatpush3.bf16.msra.mxu1 %v494_v18  ;;  %514 = vmatprep.subr.bf16.mxu0 %v626_v0 }
  0x37   :  { %496 = vmatprep.subr.bf16.mxu1 %v626_v0 }
  0x39   :  { %516 = vmatpush3.bf16.msra.mxu0 %v515_v39 }
  0x3a   :  { %498 = vmatpush3.bf16.msra.mxu1 %v497_v21  ;;  %517 = vmatprep.subr.bf16.mxu0 %v626_v0 }
  0x3b   :  { %499 = vmatprep.subr.bf16.mxu1 %v626_v0 }
  0x3d   :  { %519 = vmatpush3.bf16.msra.mxu0 %v518_v42 }
  0x3e   :  { %501 = vmatpush3.bf16.msra.mxu1 %v500_v24  ;;  %520 = vmatprep.subr.bf16.mxu0 %v626_v0 }
  0x3f   :  { %502 = vmatprep.subr.bf16.mxu1 %v626_v0 }
  0x41   :  { %522 = vmatpush3.bf16.msra.mxu0 %v521_v45 }
  0x42   :  { %504 = vmatpush3.bf16.msra.mxu1 %v503_v27  ;;  %523 = vmatprep.subr.bf16.mxu0 %v626_v0 }
  0x43   :  { %505 = vmatprep.subr.bf16.mxu1 %v626_v0 }
  0x45   :  { %525 = vmatpush3.bf16.msra.mxu0 %v524_v51 }
  0x46   :  { %507 = vmatpush3.bf16.msra.mxu1 %v506_v30  ;;  %526 = vmatprep.subr.bf16.mxu0 %v626_v0 }
  0x49   :  { %528 = vmatpush3.bf16.msra.mxu0 %v527_v54 }
  0x4a   :  { %529 = vmatprep.subr.bf16.mxu0 %v626_v0 }
  0x4d   :  { %531 = vmatpush3.bf16.msra.mxu0 %v530_v57 }
 0x102   :  { %v112_v46 = vpop.f32.mrb[0].mxu0 }
 0x103   :  { %540 = vtanh.f32 %v112_v46  ;;  %v410_v47 = vpop.f32.mrb[1].mxu0 }
 0x10d   :  { %v541_v48 = vpop.eup %540 }
 0x10e   :  { %444 = vmatmul.mubr.f32.vlgmr.msra.gmra.mrb[0].mxu1 %v541_v48 }
 0x1e1   :  { %v204_v59 = vpop.f32.mrb[0].mxu1 }
 0x1e2   :  { %v205_v60 = vadd.f32 %v362_v58, %v204_v59  ;;  %v445_v61 = vpop.f32.mrb[1].mxu1 }
 0x1e4   :  { %542 = vtanh.f32 %v205_v60 }
 0x1ee   :  { %v543_v62 = vpop.eup %542 }
 0x1ef   :  { %479 = vmatmul.mubr.f32.vlgmr.msra.gmra.mrb[2].mxu0 %v543_v62 }
 0x2c2   :  { %v296_v3 = vpop.f32.mrb[2].mxu0 }
 0x2c3   :  { %v297_v4 = vadd.f32 %v363_v2, %v296_v3  ;;  %v480_v5 = vpop.f32.mrb[3].mxu0 }
 0x2c5   :  { %v303_v6 = vsel %vm302_vm2, %v297_v4, -1e+30 }
 0x2c6   :  { %304 = vmax.xlane.f32.xlu0 %v303_v6 }
 0x353   :  { %v305_v7 = vpop.xlane.xlu0 %304 }
 0x354   :  { %v306_v0 = vsub.f32 %v303_v6, %v305_v7  ;;  %vm316_vm3 = vcmp.ge.f32.partialorder %v303_v6, %v305_v7 }
 0x355   :  { %v317_v8 = vsel %vm316_vm3, %v301_v1, 128 }
 0x356   :  { %v307_v9 = vmul.f32 1.442695, %v306_v0  ;;  %v319_v10 = vshra.s32 %v317_v8, 16  ;;  %v318_v13 = vand.u32 65535, %v317_v8 }
 0x358   :  { %544 = vpow2.f32 %v307_v9  ;;  %v321_v11 = vcvt.s32.f32 %v319_v10  ;;  %v320_v15 = vcvt.s32.f32 %v318_v13 }
 0x35a   :  { %322 = vmin.xlane.f32.xlu0 %v321_v11 }
 0x362   :  { %v545_v12 = vpop.eup %544 }
 0x363   :  { %309 = vadd.xlane.f32.xlu1 %v545_v12 }
 0x3e7   :  { %v323_v14 = vpop.xlane.xlu0 %322 }
 0x3e8   :  { %vm324_vm4 = vcmp.eq.f32.partialorder %v321_v11, %v323_v14  ;;  %v329_v19 = vcvt.f32.s32 %v323_v14 }
 0x3e9   :  { %v325_v16 = vsel %vm324_vm4, %v320_v15, inf }
 0x3ea   :  { %326 = vmin.xlane.f32.xlu1 %v325_v16  ;;  %v330_v22 = vshll.u32 %v329_v19, 16 }
 0x3f0   :  { %v310_v17 = vpop.xlane.xlu1 %309 }
 0x3f1   :  { %546 = vlog2.f32 %v310_v17 }
 0x3f2   :  { %548 = vrcp.f32 %v310_v17 }
 0x3fb   :  { %v547_v18 = vpop.eup %546 }
 0x3fc   :  { %v314_v21 = vmul.f32 0.6931472, %v547_v18  ;;  %v549_v27 = vpop.eup %548 }
 0x3fd   :  { %v312_v28 = vmul.f32 %v549_v27, %v545_v12 }
 0x3fe   :  { %v315_v25 = vsub.f32 %v306_v0, %v314_v21 }
 0x3ff   :  { %v336_v29 = vsel %vm302_vm2, %v312_v28, 0.0 }
 0x400   :  { %v338_v31 = vsel %vm337_vm6, %v297_v4, %v336_v29 }
 0x477   :  { %v327_v20 = vpop.xlane.xlu1 %326 }
 0x478   :  { %v328_v23 = vcvt.f32.s32 %v327_v20 }
 0x47a   :  { %v331_v24 = vadd.s32 %v330_v22, %v328_v23 }
 0x47c   :  { %vm332_vm5 = vcmp.eq.s32.totalorder %v301_v1, %v331_v24  ;;  %v342_v30 = vcvt.s32.f32 %v331_v24 }
 0x47d   :  { %v333_v26 = vsel %vm332_vm5, %v315_v25, 0.0 }
 0x47e   :  { %334 = vadd.xlane.f32.xlu0 %v333_v26 }
 0x50b   :  { %v335_v32 = vpop.xlane.xlu0 %334 }
 0x50c   :  { %v340_v33 = vsel %vm339_vm7, %v335_v32, %v338_v31 }
 0x50d   :  { %v343_v34 = vsel %vm341_vm8, %v342_v30, %v340_v33 }
 0x50e   :  { %344 = vst [vmem:[#allocation7] sm:$0xff] %v343_v34 }
 0x50f   :  { %605 = shalt.err (!%p602_p6)
}
 0x510   :  { %s606_s10 = scalar_lea.hbm %s712_s2, 128 }
 0x511   :  { %p607_p7 = scmp.ne.s32.totalorder %s712_s2, %s606_s10  ;;  %p610_p8 = scmp.lt.u32.totalorder %s606_s10, %s712_s2 }
 0x513   :  { %p612_p9 = pnand %p610_p8, %p607_p7 }
 0x515   :  { %615 = shalt.err (!%p612_p9)
}
 0x516   :  { %354 = dma.vmem_to_hbm [thread:$0]  %s352_s6, 128, %s712_s2, [#allocation4]  }
 0x517   :  { %620 = dma.done.wait [#allocation4], 128  }
 0x518   :  { %621 = vsyncadd [#allocation4], 4294967168 }
 0x519   :  { %358 = vsyncpa [#allocation3], 1 }
 0x51a   :  { %359 = vsyncpa [#allocation6], 1 }
 0x51b   :  { %360 = vsyncpa [#allocation4], 1 }

</bundles_post_ra>
